<compile_context>
chip_gen: v5e
topology: v5e:2x2
jax: 0.10.0
libtpu: 0.0.40
codegen_flags: <defaults>
</compile_context>

<pallas_src>
import jax
import jax.numpy as jnp
from jax.experimental import pallas as pl
from jax.experimental.pallas import tpu as pltpu

EPS = 1e-5  # PyTorch BatchNorm2d default


def _transition_kernel(x_ref, w_ref, b_ref, o_ref):
    # x_ref : (4, 1, Tp, Cin)  four 2x2-pool quadrants of one spatial tile
    # w_ref : (Cin, Cout)      BN-folded 1x1 conv weight
    # b_ref : (1, Cout)        BN-folded bias
    # o_ref : (1, Tp, Cout)
    pooled = (x_ref[0, 0, :, :] + x_ref[1, 0, :, :] +
              x_ref[2, 0, :, :] + x_ref[3, 0, :, :]) * 0.25        # (Tp, Cin)
    y = jnp.dot(pooled, w_ref[...], preferred_element_type=jnp.float32)
    o_ref[0, :, :] = (y + b_ref[...]).astype(o_ref.dtype)          # (Tp, Cout)


def _pick_tile(P, Cin, Cout, budget_bytes=8 * 1024 * 1024):
    """Largest pooled-spatial tile dividing P whose double-buffered in+out
    tiles (f32) stay under `budget_bytes` (keeps v7x's 64 MiB VMEM happy)."""
    for t in (2048, 1024, 512, 256, 128, 64, 32, 16, 8):
        if P % t == 0:
            need = 2 * (4 * t * Cin + t * Cout) * 4   # dbl-buffered x-tile + out-tile
            if need <= budget_bytes:
                return t
    return P  # tiny / odd shapes: single full-extent block


def transition_forward(x_nchw, gamma, beta, conv_w):
    """x_nchw: (N, C_in, H, W); conv_w: (C_out, C_in, 1, 1).  Returns NCHW."""
    N, Cin, H, W = x_nchw.shape
    Cout = conv_w.shape[0]
    assert H % 2 == 0 and W % 2 == 0
    Ho, Wo = H // 2, W // 2
    P = Ho * Wo

    x_nchw = x_nchw.astype(jnp.float32)

    # --- BatchNorm batch statistics (training mode, biased) : plain-JAX pre-pass.
    mu = jnp.mean(x_nchw, axis=(0, 2, 3))                         # (Cin,)
    var = jnp.var(x_nchw, axis=(0, 2, 3))                         # (Cin,) biased
    scale = gamma.astype(jnp.float32) * jax.lax.rsqrt(var + EPS)  # (Cin,)
    shift = beta.astype(jnp.float32) - mu * scale                 # (Cin,)

    # --- Fold BN affine into the 1x1 conv weight / bias.
    w = jnp.transpose(conv_w.reshape(Cout, Cin), (1, 0)).astype(jnp.float32)  # (Cin, Cout)
    w_fold = w * scale[:, None]                                   # (Cin, Cout)
    b_fold = (shift @ w).reshape(1, Cout)                         # (1, Cout)

    # --- Single layout transform: NCHW -> (quadrant=4, N, P, Cin), channels-last.
    x4 = x_nchw.reshape(N, Cin, Ho, 2, Wo, 2)
    x4 = jnp.transpose(x4, (3, 5, 0, 2, 4, 1)).reshape(4, N, P, Cin)

    Tp = _pick_tile(P, Cin, Cout)
    grid = (N, P // Tp)

    out = pl.pallas_call(
        _transition_kernel,
        out_shape=jax.ShapeDtypeStruct((N, P, Cout), jnp.float32),
        grid_spec=pltpu.PrefetchScalarGridSpec(
            num_scalar_prefetch=0,
            grid=grid,
            in_specs=[
                pl.BlockSpec((4, 1, Tp, Cin), lambda i, j: (0, i, j, 0)),
                pl.BlockSpec((Cin, Cout), lambda i, j: (0, 0)),
                pl.BlockSpec((1, Cout), lambda i, j: (0, 0)),
            ],
            out_specs=pl.BlockSpec((1, Tp, Cout), lambda i, j: (i, j, 0)),
        ),
        compiler_params=pltpu.CompilerParams(
            dimension_semantics=("parallel", "parallel"),
            vmem_limit_bytes=32 * 1024 * 1024,
        ),
    )(x4, w_fold, b_fold)

    # Back to NCHW: (N, Ho, Wo, Cout) -> (N, Cout, Ho, Wo)
    return jnp.transpose(out.reshape(N, Ho, Wo, Cout), (0, 3, 1, 2))


def transition_reference(x_nchw, gamma, beta, conv_w):
    """Pure-JAX reference matching the PyTorch training-mode forward."""
    mu = x_nchw.mean(axis=(0, 2, 3), keepdims=True)
    var = ((x_nchw - mu) ** 2).mean(axis=(0, 2, 3), keepdims=True)
    xn = (x_nchw - mu) / jnp.sqrt(var + EPS)
    xn = xn * gamma[None, :, None, None] + beta[None, :, None, None]
    y = jnp.einsum('nchw,oc->nohw', xn, conv_w.reshape(conv_w.shape[0], -1),
                   precision=jax.lax.Precision.HIGHEST)
    N, O, H, W = y.shape
    return y.reshape(N, O, H // 2, 2, W // 2, 2).mean(axis=(3, 5))


if __name__ == "__main__":
    # Small shapes: N=2, C_in=8, C_out=4, H=W=16.
    N, C_in, C_out, H, W = 2, 8, 4, 16, 16

    key = jax.random.PRNGKey(0)
    kx, kg, kb, kw = jax.random.split(key, 4)
    x = jax.random.normal(kx, (N, C_in, H, W), dtype=jnp.float32)
    gamma = jax.random.normal(kg, (C_in,), dtype=jnp.float32) * 0.1 + 1.0
    beta = jax.random.normal(kb, (C_in,), dtype=jnp.float32) * 0.1
    conv_w = jax.random.normal(kw, (C_out, C_in, 1, 1), dtype=jnp.float32) * 0.1

    out = transition_forward(x, gamma, beta, conv_w)
    out = jax.block_until_ready(out)

    ref = transition_reference(x, gamma, beta, conv_w)
    assert out.shape == (N, C_out, H // 2, W // 2), out.shape
    assert jnp.allclose(out, ref, rtol=1e-4, atol=1e-4), (
        float(jnp.max(jnp.abs(out - ref))))

    print("KERNEL_OK")
</pallas_src>

<mosaic_0001>
module attributes {stable_mosaic.version = 11 : i64} {
  func.func @_transition_kernel(%arg0: i32, %arg1: i32, %arg2: memref<4x1x64x8xf32, #tpu.memory_space<vmem>>, %arg3: memref<8x4xf32, #tpu.memory_space<vmem>>, %arg4: memref<1x4xf32, #tpu.memory_space<vmem>>, %arg5: memref<1x64x4xf32, #tpu.memory_space<vmem>>) attributes {dimension_semantics = [#tpu.dimension_semantics<parallel>, #tpu.dimension_semantics<parallel>], iteration_bounds = array<i64: 2, 1>, scalar_prefetch = 0 : i64, scratch_operands = 0 : i64, tpu.core_type = #tpu.core_type<tc>, window_params = [{transform_indices = @transform_0, window_bounds = array<i64: 4, 1, 64, 8>}, {pipeline_mode = #tpu.pipeline_mode<synchronous>, transform_indices = @transform_1, window_bounds = array<i64: 8, 4>}, {pipeline_mode = #tpu.pipeline_mode<synchronous>, transform_indices = @transform_2, window_bounds = array<i64: 1, 4>}, {transform_indices = @transform_3, window_bounds = array<i64: 1, 64, 4>}]} {
    %c0 = arith.constant 0 : index
    %c0_0 = arith.constant 0 : index
    %c0_1 = arith.constant 0 : index
    %c0_2 = arith.constant 0 : index
    %0 = vector.load %arg2[%c0, %c0_0, %c0_1, %c0_2] : memref<4x1x64x8xf32, #tpu.memory_space<vmem>>, vector<1x1x64x8xf32>
    %1 = vector.shape_cast %0 : vector<1x1x64x8xf32> to vector<64x8xf32>
    %c1 = arith.constant 1 : index
    %c0_3 = arith.constant 0 : index
    %c0_4 = arith.constant 0 : index
    %c0_5 = arith.constant 0 : index
    %2 = vector.load %arg2[%c1, %c0_3, %c0_4, %c0_5] : memref<4x1x64x8xf32, #tpu.memory_space<vmem>>, vector<1x1x64x8xf32>
    %3 = vector.shape_cast %2 : vector<1x1x64x8xf32> to vector<64x8xf32>
    %4 = arith.addf %1, %3 : vector<64x8xf32>
    %c2 = arith.constant 2 : index
    %c0_6 = arith.constant 0 : index
    %c0_7 = arith.constant 0 : index
    %c0_8 = arith.constant 0 : index
    %5 = vector.load %arg2[%c2, %c0_6, %c0_7, %c0_8] : memref<4x1x64x8xf32, #tpu.memory_space<vmem>>, vector<1x1x64x8xf32>
    %6 = vector.shape_cast %5 : vector<1x1x64x8xf32> to vector<64x8xf32>
    %7 = arith.addf %4, %6 : vector<64x8xf32>
    %c3 = arith.constant 3 : index
    %c0_9 = arith.constant 0 : index
    %c0_10 = arith.constant 0 : index
    %c0_11 = arith.constant 0 : index
    %8 = vector.load %arg2[%c3, %c0_9, %c0_10, %c0_11] : memref<4x1x64x8xf32, #tpu.memory_space<vmem>>, vector<1x1x64x8xf32>
    %9 = vector.shape_cast %8 : vector<1x1x64x8xf32> to vector<64x8xf32>
    %10 = arith.addf %7, %9 : vector<64x8xf32>
    %cst = arith.constant 2.500000e-01 : f32
    %11 = vector.broadcast %cst : f32 to vector<64x8xf32>
    %12 = arith.mulf %10, %11 : vector<64x8xf32>
    %c0_12 = arith.constant 0 : index
    %c0_13 = arith.constant 0 : index
    %13 = vector.load %arg3[%c0_12, %c0_13] : memref<8x4xf32, #tpu.memory_space<vmem>>, vector<8x4xf32>
    %cst_14 = arith.constant dense<0.000000e+00> : vector<64x4xf32>
    %14 = tpu.matmul %12, %13, %cst_14 {dimension_numbers = #tpu.dot_dimension_numbers<[1], [0], [0], [1], [0, 0, 1, 1], [], []>} : vector<64x8xf32>, vector<8x4xf32>, vector<64x4xf32> -> vector<64x4xf32>
    %c0_15 = arith.constant 0 : index
    %c0_16 = arith.constant 0 : index
    %15 = vector.load %arg4[%c0_15, %c0_16] : memref<1x4xf32, #tpu.memory_space<vmem>>, vector<1x4xf32>
    %16 = vector.broadcast %15 : vector<1x4xf32> to vector<64x4xf32>
    %17 = arith.addf %14, %16 : vector<64x4xf32>
    %c0_17 = arith.constant 0 : index
    %c0_18 = arith.constant 0 : index
    %c0_19 = arith.constant 0 : index
    %18 = vector.load %arg5[%c0_17, %c0_18, %c0_19] : memref<1x64x4xf32, #tpu.memory_space<vmem>>, vector<1x64x4xf32>
    %19 = vector.shape_cast %18 : vector<1x64x4xf32> to vector<64x4xf32>
    %20 = vector.shape_cast %17 : vector<64x4xf32> to vector<1x64x4xf32>
    tpu.vector_store %arg5[%c0_17, %c0_18, %c0_19], %20 {strides = array<i32>} : memref<1x64x4xf32, #tpu.memory_space<vmem>>, vector<1x64x4xf32>,
    return
  }
  func.func @transform_0(%arg0: i32, %arg1: i32) -> (i32, i32, i32, i32) {
    %c0_i32 = arith.constant 0 : i32
    %c0_i32_0 = arith.constant 0 : i32
    %c0_i32_1 = arith.constant 0 : i32
    return %c0_i32, %arg0, %arg1, %c0_i32_0 : i32, i32, i32, i32
  }
  func.func @transform_1(%arg0: i32, %arg1: i32) -> (i32, i32) {
    %c0_i32 = arith.constant 0 : i32
    %c0_i32_0 = arith.constant 0 : i32
    %c0_i32_1 = arith.constant 0 : i32
    return %c0_i32, %c0_i32_0 : i32, i32
  }
  func.func @transform_2(%arg0: i32, %arg1: i32) -> (i32, i32) {
    %c0_i32 = arith.constant 0 : i32
    %c0_i32_0 = arith.constant 0 : i32
    %c0_i32_1 = arith.constant 0 : i32
    return %c0_i32, %c0_i32_0 : i32, i32
  }
  func.func @transform_3(%arg0: i32, %arg1: i32) -> (i32, i32, i32) {
    %c0_i32 = arith.constant 0 : i32
    %c0_i32_0 = arith.constant 0 : i32
    return %arg0, %arg1, %c0_i32 : i32, i32, i32
  }
}

</mosaic_0001>

<bundles_post_ra>
// kernel: tpu_custom_call.1
= control target key start
LH: loop header
LB: loop body
LE: loop exit
PB: predicated region body
PF: predicated region fallthrough
CT: control target
= control target key end

     0   :  { %s747_s12 = smov 0   ;;  %s749_s13 = smov 0   ;;  %s937_s0 = inlined_call_operand.vmem [shape: f32[4,2,64,8], index: 0, kind: input, shape index: {}]   ;;  %s938_s1 = inlined_call_operand.vmem [shape: f32[8,4], index: 1, kind: input, shape index: {}]   ;;  %s939_s2 = inlined_call_operand.vmem [shape: f32[1,4], index: 2, kind: input, shape index: {}]   ;;  %s940_s3 = inlined_call_operand.vmem [shape: f32[2,64,4], index: 3, kind: output, shape index: {}]  }
   0x1   :  { %s751_s14 = smov 0   ;;  %s753_s15 = smov 0  }
   0x2   :  { %s755_s16 = smov 0  }
   0x3 LB: > { %s25_s17 = sadd.s32 1, %s721_s15  ;;  %p41_p1 = scmp.ne.s32.totalorder %s713_s13, %s709_s12  ;;  %s725_s16 = sphi %s755_s16, %s13_s16   ;;  %s721_s15 = sphi %s753_s15, %s944_s15   ;;  %s717_s14 = sphi %s751_s14, %s943_s14   ;;  %s713_s13 = sphi %s749_s13, %s942_s13   ;;  %s709_s12 = sphi %s747_s12, %s941_s12  }
   0x4   : > { %p27_p0 = scmp.ge.s32.totalorder %s25_s17, 2  ;;  %p42_p2 = scmp.eq.s32.totalorder %s725_s16, 0 }
   0x5   : > { %s34_s19 = sadd.s32 1, %s713_s13  ;;  %p599_p5 = scmp.ge.s32.totalorder %s725_s16, 2 }
   0x6   : > { %s946_s17 = smov (%p27_p0, %s25_s17), 0  ;;  %p43_p3 = por %p42_p2, %p41_p1 }
   0x7   : > { %s29_s18 = ssub.s32 %s721_s15, %s946_s17  ;;  %143 = sbr.rel (%p599_p5) target bundleno = 48 (0x30), region = 24 }
   0x8   : > { %p32_p4 = scmp.eq.s32.totalorder %s29_s18, 0 }
   0xa   : > { %s782_s20 = scalar_select %p32_p4, %s713_s13, %s34_s19  }
   0xc   : > { %146 = sbr.rel (!%p43_p3) target bundleno = 48 (0x30), region = 28  ;;  %s148_s21 = sand.u32 (%p43_p3), 1, %s713_s13  }
   0xd   : > { %s641_s22 = sshll.u32 (%p43_p3), %s721_s15, 6  ;;  %s600_s23 = sshll.u32 (%p43_p3), %s148_s21, 8 }
   0xe   : > { %s790_s26 = scalar_lea.vmem (%p43_p3), %s937_s0, %s641_s22  ;;  %s795_s27 = scalar_lea.vmem (%p43_p3), [#allocation2], %s600_s23 }
   0xf   : > { %v246_v0 = vld [vmem:[%s790_s26] sm:$0xff] (%p43_p3)  ;;  %v248_v1 = vld [vmem:[%s790_s26 + $0x8] sm:$0xff] (%p43_p3)  ;;  %v250_v2 = vld [vmem:[%s790_s26 + $0x10] sm:$0xff] (%p43_p3) }
  0x10   : > { %247 = vst [vmem:[%s795_s27] sm:$0xff] (%p43_p3), %v246_v0  ;;  %v252_v3 = vld [vmem:[%s790_s26 + $0x18] sm:$0xff] (%p43_p3)  ;;  %v254_v4 = vld [vmem:[%s790_s26 + $0x20] sm:$0xff] (%p43_p3)  ;;  %v256_v5 = vld [vmem:[%s790_s26 + $0x28] sm:$0xff] (%p43_p3) }
  0x11   : > { %249 = vst [vmem:[%s795_s27 + $0x8] sm:$0xff] %v248_v1  ;;  %v258_v6 = vld [vmem:[%s790_s26 + $0x30] sm:$0xff]  ;;  %v260_v7 = vld [vmem:[%s790_s26 + $0x38] sm:$0xff]  ;;  %v262_v8 = vld [vmem:[%s790_s26 + $0x80] sm:$0xff] }
  0x12   : > { %251 = vst [vmem:[%s795_s27 + $0x10] sm:$0xff] %v250_v2  ;;  %v264_v9 = vld [vmem:[%s790_s26 + $0x88] sm:$0xff]  ;;  %v266_v10 = vld [vmem:[%s790_s26 + $0x90] sm:$0xff]  ;;  %v268_v11 = vld [vmem:[%s790_s26 + $0x98] sm:$0xff] }
  0x13   : > { %253 = vst [vmem:[%s795_s27 + $0x18] sm:$0xff] %v252_v3  ;;  %v270_v12 = vld [vmem:[%s790_s26 + $0xa0] sm:$0xff]  ;;  %v272_v13 = vld [vmem:[%s790_s26 + $0xa8] sm:$0xff]  ;;  %v274_v14 = vld [vmem:[%s790_s26 + $0xb0] sm:$0xff] }
  0x14   : > { %255 = vst [vmem:[%s795_s27 + $0x20] sm:$0xff] %v254_v4  ;;  %v276_v15 = vld [vmem:[%s790_s26 + $0xb8] sm:$0xff]  ;;  %v278_v16 = vld [vmem:[%s790_s26 + $0x100] sm:$0xff]  ;;  %v280_v17 = vld [vmem:[%s790_s26 + $0x108] sm:$0xff] }
  0x15   : > { %257 = vst [vmem:[%s795_s27 + $0x28] sm:$0xff] %v256_v5  ;;  %v282_v18 = vld [vmem:[%s790_s26 + $0x110] sm:$0xff]  ;;  %v284_v19 = vld [vmem:[%s790_s26 + $0x118] sm:$0xff]  ;;  %v286_v20 = vld [vmem:[%s790_s26 + $0x120] sm:$0xff] }
  0x16   : > { %259 = vst [vmem:[%s795_s27 + $0x30] sm:$0xff] %v258_v6  ;;  %v288_v21 = vld [vmem:[%s790_s26 + $0x128] sm:$0xff]  ;;  %v290_v22 = vld [vmem:[%s790_s26 + $0x130] sm:$0xff]  ;;  %v292_v23 = vld [vmem:[%s790_s26 + $0x138] sm:$0xff] }
  0x17   : > { %261 = vst [vmem:[%s795_s27 + $0x38] sm:$0xff] %v260_v7  ;;  %v294_v24 = vld [vmem:[%s790_s26 + $0x180] sm:$0xff]  ;;  %v296_v25 = vld [vmem:[%s790_s26 + $0x188] sm:$0xff]  ;;  %v298_v26 = vld [vmem:[%s790_s26 + $0x190] sm:$0xff] }
  0x18   : > { %263 = vst [vmem:[%s795_s27 + $0x40] sm:$0xff] %v262_v8  ;;  %v300_v27 = vld [vmem:[%s790_s26 + $0x198] sm:$0xff]  ;;  %v302_v28 = vld [vmem:[%s790_s26 + $0x1a0] sm:$0xff]  ;;  %v304_v29 = vld [vmem:[%s790_s26 + $0x1a8] sm:$0xff] }
  0x19   : > { %265 = vst [vmem:[%s795_s27 + $0x48] sm:$0xff] %v264_v9  ;;  %v306_v30 = vld [vmem:[%s790_s26 + $0x1b0] sm:$0xff]  ;;  %v308_v31 = vld [vmem:[%s790_s26 + $0x1b8] sm:$0xff] }
  0x1a   : > { %267 = vst [vmem:[%s795_s27 + $0x50] sm:$0xff] %v266_v10 }
  0x1b   : > { %269 = vst [vmem:[%s795_s27 + $0x58] sm:$0xff] %v268_v11 }
  0x1c   : > { %271 = vst [vmem:[%s795_s27 + $0x60] sm:$0xff] %v270_v12 }
  0x1d   : > { %273 = vst [vmem:[%s795_s27 + $0x68] sm:$0xff] %v272_v13 }
  0x1e   : > { %275 = vst [vmem:[%s795_s27 + $0x70] sm:$0xff] %v274_v14 }
  0x1f   : > { %277 = vst [vmem:[%s795_s27 + $0x78] sm:$0xff] %v276_v15 }
  0x20   : > { %279 = vst [vmem:[%s795_s27 + $0x80] sm:$0xff] %v278_v16 }
  0x21   : > { %281 = vst [vmem:[%s795_s27 + $0x88] sm:$0xff] %v280_v17 }
  0x22   : > { %283 = vst [vmem:[%s795_s27 + $0x90] sm:$0xff] %v282_v18 }
  0x23   : > { %285 = vst [vmem:[%s795_s27 + $0x98] sm:$0xff] %v284_v19 }
  0x24   : > { %287 = vst [vmem:[%s795_s27 + $0xa0] sm:$0xff] %v286_v20 }
  0x25   : > { %289 = vst [vmem:[%s795_s27 + $0xa8] sm:$0xff] %v288_v21 }
  0x26   : > { %291 = vst [vmem:[%s795_s27 + $0xb0] sm:$0xff] %v290_v22 }
  0x27   : > { %293 = vst [vmem:[%s795_s27 + $0xb8] sm:$0xff] %v292_v23 }
  0x28   : > { %295 = vst [vmem:[%s795_s27 + $0xc0] sm:$0xff] %v294_v24 }
  0x29   : > { %297 = vst [vmem:[%s795_s27 + $0xc8] sm:$0xff] %v296_v25 }
  0x2a   : > { %299 = vst [vmem:[%s795_s27 + $0xd0] sm:$0xff] %v298_v26 }
  0x2b   : > { %301 = vst [vmem:[%s795_s27 + $0xd8] sm:$0xff] %v300_v27 }
  0x2c   : > { %303 = vst [vmem:[%s795_s27 + $0xe0] sm:$0xff] %v302_v28 }
  0x2d   : > { %305 = vst [vmem:[%s795_s27 + $0xe8] sm:$0xff] %v304_v29 }
  0x2e   : > { %307 = vst [vmem:[%s795_s27 + $0xf0] sm:$0xff] %v306_v30 }
  0x2f   : > { %309 = vst [vmem:[%s795_s27 + $0xf8] sm:$0xff] %v308_v31 }
  0x30 PF: > { %p603_p6 = scmp.ge.s32.totalorder %s725_s16, 1  ;;  %p314_p7 = scmp.lt.s32.totalorder %s725_s16, 3 }
  0x32   : > { %p315_p8 = pnand %p603_p6, %p314_p7 }
  0x33   : > { %s321_s30 = sand.u32 (!%p315_p8), 1, %s709_s12   ;;  %p350_p9 = scmp.lt.s32.totalorder (!%p315_p8), %s717_s14, 1 }
  0x34   : > { %318 = sbr.rel (%p315_p8) target bundleno = 211 (0xd3), region = 66  ;;  %s604_s4 = sshll.u32 (!%p315_p8), %s321_s30, 8 }
  0x35   : > { %s864_s5 = scalar_lea.vmem (!%p315_p8), [#allocation2], %s604_s4 }
  0x39   : > { %v426_v32 = vld [vmem:[%s938_s1] sm:$0xff]  ;;  %v365_v37 = vld [vmem:[%s864_s5 + $0x30] sm:$0xff]  ;;  %v364_v55 = vld [vmem:[%s864_s5 + $0x28] sm:$0xff]  ;;  %vm431_vm0 = vcmask 64512   ;;  %s948_s14 = smov (!%p350_p9, %s717_s14), 1  ;;  %vm497_vm1 = vcmask 31744  }
  0x3a   : > { %644 = vmatpush.msra.mxu2 %v426_v32  ;;  %645 = vmatpush.msra.mxu3 %v426_v32  ;;  %v363_v33 = vld [vmem:[%s864_s5 + $0x20] sm:$0xff]  ;;  %v613_v38 = vld [vmem:[%s864_s5 + $0x70] sm:$0xff]  ;;  %v612_v56 = vld [vmem:[%s864_s5 + $0x68] sm:$0xff]  ;;  %s642_s6 = sshll.u32 %s948_s14, 6 }
  0x3b   : > { %471 = vmatpush.msra.mxu0 %v426_v32  ;;  %643 = vmatpush.msra.mxu1 %v426_v32  ;;  %v611_v34 = vld [vmem:[%s864_s5 + $0x60] sm:$0xff]  ;;  %v382_v40 = vadd.f32 %v613_v38, %v365_v37  ;;  %v621_v41 = vld [vmem:[%s864_s5 + $0xb0] sm:$0xff]  ;;  %v381_v60 = vadd.f32 %v612_v56, %v364_v55  ;;  %v620_v61 = vld [vmem:[%s864_s5 + $0xa8] sm:$0xff]  ;;  %s357_s11 = scalar_lea.vmem %s940_s3, %s642_s6 }
  0x3c   : > { %v619_v35 = vld [vmem:[%s864_s5 + $0xa0] sm:$0xff]  ;;  %v380_v36 = vadd.f32 %v611_v34, %v363_v33  ;;  %v629_v44 = vld [vmem:[%s864_s5 + $0xf0] sm:$0xff]  ;;  %v366_v62 = vld [vmem:[%s864_s5 + $0x38] sm:$0xff] }
  0x3d   : > { %v627_v39 = vld [vmem:[%s864_s5 + $0xe0] sm:$0xff]  ;;  %v399_v47 = vadd.f32 %v621_v41, %v382_v40  ;;  %v361_v49 = vld [vmem:[%s864_s5 + $0x10] sm:$0xff]  ;;  %v628_v1 = vld [vmem:[%s864_s5 + $0xe8] sm:$0xff]  ;;  %v398_v6 = vadd.f32 %v620_v61, %v381_v60 }
  0x3e   : > { %v359_v42 = vld [vmem:[%s864_s5] sm:$0xff]  ;;  %v397_v43 = vadd.f32 %v619_v35, %v380_v36  ;;  %v609_v50 = vld [vmem:[%s864_s5 + $0x50] sm:$0xff]  ;;  %v614_v2 = vld [vmem:[%s864_s5 + $0x78] sm:$0xff] }
  0x3f   : > { %v607_v45 = vld [vmem:[%s864_s5 + $0x40] sm:$0xff]  ;;  %v617_v51 = vld [vmem:[%s864_s5 + $0x90] sm:$0xff]  ;;  %v378_v54 = vadd.f32 %v609_v50, %v361_v49  ;;  %v416_v57 = vadd.f32 %v629_v44, %v399_v47  ;;  %v622_v3 = vld [vmem:[%s864_s5 + $0xb8] sm:$0xff]  ;;  %v383_v7 = vadd.f32 %v614_v2, %v366_v62  ;;  %v415_v17 = vadd.f32 %v628_v1, %v398_v6 }
  0x40   : > { %v615_v46 = vld [vmem:[%s864_s5 + $0x80] sm:$0xff]  ;;  %v376_v48 = vadd.f32 %v607_v45, %v359_v42  ;;  %v414_v52 = vadd.f32 %v627_v39, %v397_v43  ;;  %v625_v59 = vld [vmem:[%s864_s5 + $0xd0] sm:$0xff]  ;;  %v360_v8 = vld [vmem:[%s864_s5 + $0x8] sm:$0xff] }
  0x41   : > { %v623_v53 = vld [vmem:[%s864_s5 + $0xc0] sm:$0xff]  ;;  %v395_v0 = vadd.f32 %v617_v51, %v378_v54  ;;  %v424_v4 = vmul.f32 0.25, %v416_v57  ;;  %v608_v9 = vld [vmem:[%s864_s5 + $0x48] sm:$0xff]  ;;  %v630_v12 = vld [vmem:[%s864_s5 + $0xf8] sm:$0xff]  ;;  %v400_v18 = vadd.f32 %v622_v3, %v383_v7  ;;  %v423_v27 = vmul.f32 0.25, %v415_v17 }
  0x42   : > { %v393_v58 = vadd.f32 %v615_v46, %v376_v48  ;;  %v422_v63 = vmul.f32 0.25, %v414_v52  ;;  %v616_v10 = vld [vmem:[%s864_s5 + $0x88] sm:$0xff]  ;;  %v377_v13 = vadd.f32 %v608_v9, %v360_v8  ;;  %v362_v14 = vld [vmem:[%s864_s5 + $0x18] sm:$0xff]  ;;  %v686_v33 = vld [vmem:[%s939_s2] ss:$0 sm:$0xff] }
  0x43   : > { %v412_v11 = vadd.f32 %v625_v59, %v395_v0  ;;  %v610_v15 = vld [vmem:[%s864_s5 + $0x58] sm:$0xff]  ;;  %637 = vmatmul.msk.f32.vlgmr.msra.gmra.mxu3 %vm431_vm0, %v424_v4  ;;  %v624_v19 = vld [vmem:[%s864_s5 + $0xc8] sm:$0xff]  ;;  %v417_v25 = vadd.f32 %v630_v12, %v400_v18 }
  0x44   : > { %v410_v5 = vadd.f32 %v623_v53, %v393_v58  ;;  %635 = vmatmul.msk.f32.vlgmr.msra.gmra.mxu2 %vm431_vm0, %v422_v63  ;;  %v379_v20 = vadd.f32 %v610_v15, %v362_v14  ;;  %v618_v21 = vld [vmem:[%s864_s5 + $0x98] sm:$0xff]  ;;  %v394_v23 = vadd.f32 %v616_v10, %v377_v13 }
  0x45   : > { %v420_v22 = vmul.f32 0.25, %v412_v11  ;;  %v626_v24 = vld [vmem:[%s864_s5 + $0xd8] sm:$0xff]  ;;  %v425_v29 = vmul.f32 0.25, %v417_v25 }
  0x46   : > { %v418_v16 = vmul.f32 0.25, %v410_v5  ;;  %v396_v26 = vadd.f32 %v618_v21, %v379_v20  ;;  %v411_v28 = vadd.f32 %v624_v19, %v394_v23 }
  0x47   : > { %633 = vmatmul.msk.f32.vlgmr.msra.gmra.mxu1 %vm431_vm0, %v420_v22 }
  0x48   : > { %631 = vmatmul.msk.f32.vlgmr.msra.gmra.mxu0 %vm431_vm0, %v418_v16  ;;  %v413_v30 = vadd.f32 %v626_v24, %v396_v26  ;;  %v419_v31 = vmul.f32 0.25, %v411_v28 }
  0x4a   : > { %v421_v32 = vmul.f32 0.25, %v413_v30 }
  0x4b   : > { %638 = vmatmul.msk.f32.gmra.mxu3 %vm431_vm0, %v425_v29 }
  0x4c   : > { %636 = vmatmul.msk.f32.gmra.mxu2 %vm431_vm0, %v423_v27 }
  0x4f   : > { %634 = vmatmul.msk.f32.gmra.mxu1 %vm431_vm0, %v421_v32 }
  0x50   : > { %632 = vmatmul.msk.f32.gmra.mxu0 %vm431_vm0, %v419_v31 }
  0xc4   : > { %v479_v36 = vpop.f32.mrf.mxu1 }
  0xc5   : > { %v473_v34 = vpop.f32.mrf.mxu0  ;;  %v480_v37 = vadd.f32 %v686_v33, %v479_v36 }
  0xc6   : > { %v474_v35 = vadd.f32 %v686_v33, %v473_v34  ;;  %v491_v40 = vpop.f32.mrf.mxu3 }
  0xc7   : > { %v485_v38 = vpop.f32.mrf.mxu2  ;;  %500 = vst.msk [vmem:[%s357_s11 + $0x10] sm:$0xff] %vm497_vm1, %v480_v37  ;;  %v492_v41 = vadd.f32 %v686_v33, %v491_v40 }
  0xc8   : > { %498 = vst.msk [vmem:[%s357_s11] sm:$0xff] %vm497_vm1, %v474_v35  ;;  %v486_v39 = vadd.f32 %v686_v33, %v485_v38 }
  0xc9   : > { %504 = vst.msk [vmem:[%s357_s11 + $0x30] sm:$0xff] %vm497_vm1, %v492_v41 }
  0xca   : > { %502 = vst.msk [vmem:[%s357_s11 + $0x20] sm:$0xff] %vm497_vm1, %v486_v39 }
  0xcc   : > { %v482_v44 = vpop.f32.mrf.mxu1 }
  0xcd   : > { %v476_v42 = vpop.f32.mrf.mxu0  ;;  %v483_v45 = vadd.f32 %v686_v33, %v482_v44 }
  0xce   : > { %v477_v43 = vadd.f32 %v686_v33, %v476_v42  ;;  %v494_v48 = vpop.f32.mrf.mxu3 }
  0xcf   : > { %v488_v46 = vpop.f32.mrf.mxu2  ;;  %501 = vst.msk [vmem:[%s357_s11 + $0x18] sm:$0xff] %vm497_vm1, %v483_v45  ;;  %v495_v49 = vadd.f32 %v686_v33, %v494_v48 }
  0xd0   : > { %499 = vst.msk [vmem:[%s357_s11 + $0x8] sm:$0xff] %vm497_vm1, %v477_v43  ;;  %v489_v47 = vadd.f32 %v686_v33, %v488_v46 }
  0xd1   : > { %505 = vst.msk [vmem:[%s357_s11 + $0x38] sm:$0xff] %vm497_vm1, %v495_v49 }
  0xd2   : > { %503 = vst.msk [vmem:[%s357_s11 + $0x28] sm:$0xff] %vm497_vm1, %v489_v47 }
  0xd3 PF: > { %s13_s16 = sadd.s32 1, %s725_s16   ;;  %s941_s12 = smov %s713_s13 }
  0xd4   : > { %p10_p10 = scmp.ge.s32.totalorder %s13_s16, 4   ;;  %s942_s13 = smov %s782_s20 }
  0xd5   : > { %s943_s14 = smov %s721_s15  ;;  %s944_s15 = smov %s946_s17 }
  0xd6   :  { %12 = sbr.rel (!%p10_p10) target bundleno = 3 (0x3), region = 108 }

</bundles_post_ra>
